<compile_context>
chip_gen: v6e
topology: v6e:2x2x1
jax: 0.10.0
libtpu: 0.0.40
codegen_flags: <defaults>
</compile_context>

<pallas_src>
import functools
import numpy as np
import jax
import jax.numpy as jnp
from jax.experimental import pallas as pl
from jax.experimental.pallas import tpu as pltpu


LANE = 128                 # lane width: keep the parallel axis a multiple of this
_VMEM_BUDGET = 12 << 20    # keep double-buffered blocks under default scoped VMEM


# ----------------------------- Pallas kernel --------------------------------

def _pair_sweep_kernel(*refs, accumulate: bool):
    """Fused forward + reverse directional recurrence (one grid step = one l).

    Data blocks are (1, C, M_tile): channels on sublanes, parallel dim on lanes.
    Grid = (num_m_tiles, L); L is the serial axis.
      forward sweep reads/writes spatial index l
      reverse sweep reads/writes spatial index L-1-l   (via index_map, no flips)
    xa_* already holds  Wa @ x + (ba + bb)  for non-boundary positions and the
    (optionally relu'd) raw boundary slice at its boundary position, so the serial
    body is just  y = relu(xa + Wb @ y_prev).
    """
    if accumulate:
        xa_f, xa_r, wb_f, wb_r, add_f, add_r, o_f, o_r, st_f, st_r = refs
    else:
        xa_f, xa_r, wb_f, wb_r, o_f, o_r, st_f, st_r = refs
        add_f = add_r = None
    l = pl.program_id(1)

    def emit(y_f, y_r):
        st_f[...] = y_f
        st_r[...] = y_r
        if accumulate:
            o_f[0] = y_f + add_f[0]
            o_r[0] = y_r + add_r[0]
        else:
            o_f[0] = y_f
            o_r[0] = y_r

    @pl.when(l == 0)
    def _():
        emit(xa_f[0], xa_r[0])

    @pl.when(l > 0)
    def _():
        y_f = jnp.maximum(
            xa_f[0] + jnp.dot(wb_f[...], st_f[...],
                              preferred_element_type=jnp.float32), 0.0)
        y_r = jnp.maximum(
            xa_r[0] + jnp.dot(wb_r[...], st_r[...],
                              preferred_element_type=jnp.float32), 0.0)
        emit(y_f, y_r)


def _pick_m_tile(m_pad, c, n_data_blocks):
    """Largest MXU-friendly tile dividing M that keeps double-buffered VMEM bounded."""
    per_lane = c * 4                                   # f32 bytes per lane-column
    lanes_cost = (2 * n_data_blocks + 2) * per_lane    # 2x data blocks + 2 scratch
    fixed = 4 * c * c * 4                              # weight blocks
    max_mt = max(LANE, (_VMEM_BUDGET - fixed) // lanes_cost)
    for t in (2048, 1024, 512, 256, 128):
        if m_pad % t == 0 and t <= max_mt:
            return t
    return LANE if m_pad % LANE == 0 else m_pad


def fused_pair_sweep(xa_f, xa_r, wb_f, wb_r, add_f=None, add_r=None):
    """Run a forward and a reverse recurrence over axis 0 in one pallas_call."""
    L, C, M = xa_f.shape
    accumulate = add_f is not None
    mt = _pick_m_tile(M, C, 6 if accumulate else 4)

    fwd_spec = pl.BlockSpec((1, C, mt), lambda m, l: (l, 0, m))
    rev_spec = pl.BlockSpec((1, C, mt), lambda m, l: (L - 1 - l, 0, m))
    w_spec = pl.BlockSpec((C, C), lambda m, l: (0, 0))

    in_specs = [fwd_spec, rev_spec, w_spec, w_spec]
    operands = [xa_f, xa_r, wb_f, wb_r]
    if accumulate:
        in_specs += [fwd_spec, rev_spec]
        operands += [add_f, add_r]

    kernel = functools.partial(_pair_sweep_kernel, accumulate=accumulate)
    return pl.pallas_call(
        kernel,
        out_shape=(jax.ShapeDtypeStruct((L, C, M), jnp.float32),
                   jax.ShapeDtypeStruct((L, C, M), jnp.float32)),
        grid_spec=pltpu.PrefetchScalarGridSpec(
            num_scalar_prefetch=0,
            grid=(M // mt, L),                      # M tiles parallel, L serial
            in_specs=in_specs,
            out_specs=[fwd_spec, rev_spec],
            scratch_shapes=[pltpu.VMEM((C, mt), jnp.float32),
                            pltpu.VMEM((C, mt), jnp.float32)],
        ),
        compiler_params=pltpu.CompilerParams(
            dimension_semantics=("parallel", "arbitrary")),
    )(*operands)


# ----------------------------- forward (glue) --------------------------------

def _pad_lanes(t):
    """Pad the last (lane) axis up to a multiple of 128 for lane-dense stores."""
    L_, C_, M_ = t.shape
    m_pad = ((M_ + LANE - 1) // LANE) * LANE
    if m_pad == M_:
        return t
    return jnp.pad(t, ((0, 0), (0, 0), (0, m_pad - M_)))


def uag_forward(x, P):
    """x: (B, C, H, W) float32.  P: dict name -> (weight (C,C), bias (C,))."""
    B, C, H, W = x.shape
    x = x.astype(jnp.float32)
    Mr, Mc = B * W, B * H

    # lane-dense working layouts: (scan axis, C, parallel axis)
    def to_rows(t):        # (B,C,H,W) -> (H, C, B*W)
        return jnp.transpose(t, (2, 1, 0, 3)).reshape(H, C, Mr)

    def rows_to_cols(t):   # (H, C, B*W) -> (W, C, B*H)  (single fused permutation)
        return jnp.transpose(t.reshape(H, C, B, W), (3, 1, 2, 0)).reshape(W, C, Mc)

    def cols_to_nchw(t):   # (W, C, B*H) -> (B, C, H, W)
        return jnp.transpose(t.reshape(W, C, B, H), (2, 1, 3, 0))

    def drive(x_lcm, name_a, name_b, boundary_idx, relu_boundary):
        # Hoisted non-recurrent term: Wa @ x + (ba + bb) for all L positions at once.
        # The boundary slice is the raw (optionally relu'd) input, since the
        # recurrence starts from the untransformed input there.
        wa, ba = P[name_a]
        _, bb = P[name_b]
        xa = jnp.einsum('oc,lcm->lom', wa, x_lcm) + (ba + bb)[None, :, None]
        bnd = x_lcm[boundary_idx]
        if relu_boundary:
            bnd = jnp.maximum(bnd, 0.0)
        return xa.at[boundary_idx].set(bnd)

    def pair(x_lcm, fwd, rev, fwd_relu, rev_relu, add_f=None, add_r=None):
        L = x_lcm.shape[0]
        xa_f = drive(x_lcm, fwd[0], fwd[1], 0, fwd_relu)
        xa_r = drive(x_lcm, rev[0], rev[1], L - 1, rev_relu)
        return fused_pair_sweep(xa_f, xa_r, P[fwd[1]][0], P[rev[1]][0],
                                add_f=add_f, add_r=add_r)

    # row sweeps on x: south (forward, boundary row untouched) + north (reverse, relu'd)
    x_r = _pad_lanes(to_rows(x))
    hs_r, hn_r = pair(x_r, ('1', '2'), ('9', '10'), False, True)

    # column sweeps: SE/SW from hs, then NE/NW from hn with the SE/SW results folded in
    hs_c = _pad_lanes(rows_to_cols(hs_r[:, :, :Mr]))
    hn_c = _pad_lanes(rows_to_cols(hn_r[:, :, :Mr]))
    hse_c, hsw_c = pair(hs_c, ('4', '5'), ('7', '8'), True, True)
    sum_f_c, sum_r_c = pair(hn_c, ('12', '13'), ('15', '16'), True, True,
                            add_f=hse_c, add_r=hsw_c)   # = hne+hse, hnw+hsw
    return cols_to_nchw((sum_f_c + sum_r_c)[:, :, :Mc])


uag_forward_jit = jax.jit(uag_forward)


# ----------------------------- numpy reference -------------------------------

def ref_forward(x_np, P_np):
    """Direct transcription of the PyTorch forward (NCHW, Conv1d k=1)."""
    B, C, H, W = x_np.shape

    def cv(name, t):  # t: (B, C, L)
        w, b = P_np[name]
        return np.einsum('oc,bcl->bol', w, t) + b[None, :, None]

    relu = lambda t: np.maximum(t, 0.0)

    hs = x_np.copy()
    for i in range(H):
        if i > 0:
            hs[:, :, i, :] = cv('1', hs[:, :, i, :]) + cv('2', hs[:, :, i - 1, :])
            hs[:, :, i, :] = relu(hs[:, :, i, :])
    hse = hs.copy()
    for j in range(W):
        if j > 0:
            hse[:, :, :, j] = cv('4', hse[:, :, :, j]) + cv('5', hse[:, :, :, j - 1])
        hse[:, :, :, j] = relu(hse[:, :, :, j])
    hsw = hs.copy()
    for j in reversed(range(W)):
        if j < W - 1:
            hsw[:, :, :, j] = cv('7', hsw[:, :, :, j]) + cv('8', hsw[:, :, :, j + 1])
        hsw[:, :, :, j] = relu(hsw[:, :, :, j])
    hn = x_np.copy()
    for i in reversed(range(H)):
        if i < H - 1:
            hn[:, :, i, :] = cv('9', hn[:, :, i, :]) + cv('10', hn[:, :, i + 1, :])
        hn[:, :, i, :] = relu(hn[:, :, i, :])
    hne = hn.copy()
    for j in range(W):
        if j > 0:
            hne[:, :, :, j] = cv('12', hne[:, :, :, j]) + cv('13', hne[:, :, :, j - 1])
        hne[:, :, :, j] = relu(hne[:, :, :, j])
    hnw = hn.copy()
    for j in reversed(range(W)):
        if j < W - 1:
            hnw[:, :, :, j] = cv('15', hnw[:, :, :, j]) + cv('16', hnw[:, :, :, j + 1])
        hnw[:, :, :, j] = relu(hnw[:, :, :, j])
    return hse + hsw + hnw + hne


# ----------------------------------- main -------------------------------------

if __name__ == "__main__":
    B, C, H, W = 2, 32, 8, 8  # small shapes; in_dim = C = 32

    # Deterministic parameter init mimicking PyTorch Conv1d default (U(-1/sqrt(C), 1/sqrt(C))).
    names = ['1', '2', '4', '5', '7', '8', '9', '10', '12', '13', '15', '16']
    key = jax.random.PRNGKey(0)
    bound = 1.0 / np.sqrt(C)
    params = {}
    for n in names:
        key, kw, kb = jax.random.split(key, 3)
        w = jax.random.uniform(kw, (C, C), jnp.float32, -bound, bound)
        b = jax.random.uniform(kb, (C,), jnp.float32, -bound, bound)
        params[n] = (w, b)

    key, kx = jax.random.split(key)
    x = jax.random.normal(kx, (B, C, H, W), jnp.float32)

    out = jax.block_until_ready(uag_forward_jit(x, params))

    # Correctness check against a plain-numpy transcription of the PyTorch forward.
    # Tolerance accounts for default (bf16-input) MXU precision along the recurrent chain.
    params_np = {k: (np.asarray(w), np.asarray(b)) for k, (w, b) in params.items()}
    ref = ref_forward(np.asarray(x), params_np)
    np.testing.assert_allclose(np.asarray(out), ref, rtol=2e-2, atol=2e-2)

    print("KERNEL_OK")
</pallas_src>

<mosaic_0001>
module attributes {stable_mosaic.version = 11 : i64} {
  func.func @_pair_sweep_kernel(%arg0: i32, %arg1: i32, %arg2: memref<1x32x128xf32, #tpu.memory_space<vmem>>, %arg3: memref<1x32x128xf32, #tpu.memory_space<vmem>>, %arg4: memref<32x32xf32, #tpu.memory_space<vmem>>, %arg5: memref<32x32xf32, #tpu.memory_space<vmem>>, %arg6: memref<1x32x128xf32, #tpu.memory_space<vmem>>, %arg7: memref<1x32x128xf32, #tpu.memory_space<vmem>>, %arg8: memref<32x128xf32, #tpu.memory_space<vmem>>, %arg9: memref<32x128xf32, #tpu.memory_space<vmem>>) attributes {dimension_semantics = [#tpu.dimension_semantics<parallel>, #tpu.dimension_semantics<arbitrary>], iteration_bounds = array<i64: 1, 8>, scalar_prefetch = 0 : i64, scratch_operands = 2 : i64, tpu.core_type = #tpu.core_type<tc>, window_params = [{transform_indices = @transform_0, window_bounds = array<i64: 1, 32, 128>}, {transform_indices = @transform_1, window_bounds = array<i64: 1, 32, 128>}, {pipeline_mode = #tpu.pipeline_mode<synchronous>, transform_indices = @transform_2, window_bounds = array<i64: 32, 32>}, {pipeline_mode = #tpu.pipeline_mode<synchronous>, transform_indices = @transform_3, window_bounds = array<i64: 32, 32>}, {transform_indices = @transform_4, window_bounds = array<i64: 1, 32, 128>}, {transform_indices = @transform_5, window_bounds = array<i64: 1, 32, 128>}]} {
    %c0_i32 = arith.constant 0 : i32
    %0 = arith.cmpi eq, %arg1, %c0_i32 : i32
    %1 = arith.extui %0 : i1 to i32
    %c0_i32_0 = arith.constant 0 : i32
    %2 = arith.cmpi ne, %1, %c0_i32_0 : i32
    scf.if %2 {
      %c0 = arith.constant 0 : index
      %c0_3 = arith.constant 0 : index
      %c0_4 = arith.constant 0 : index
      %6 = vector.load %arg2[%c0, %c0_3, %c0_4] : memref<1x32x128xf32, #tpu.memory_space<vmem>>, vector<1x32x128xf32>
      %7 = vector.shape_cast %6 : vector<1x32x128xf32> to vector<32x128xf32>
      %c0_5 = arith.constant 0 : index
      %c0_6 = arith.constant 0 : index
      %c0_7 = arith.constant 0 : index
      %8 = vector.load %arg3[%c0_5, %c0_6, %c0_7] : memref<1x32x128xf32, #tpu.memory_space<vmem>>, vector<1x32x128xf32>
      %9 = vector.shape_cast %8 : vector<1x32x128xf32> to vector<32x128xf32>
      %c0_8 = arith.constant 0 : index
      %c0_9 = arith.constant 0 : index
      %10 = vector.load %arg8[%c0_8, %c0_9] : memref<32x128xf32, #tpu.memory_space<vmem>>, vector<32x128xf32>
      tpu.vector_store %arg8[%c0_8, %c0_9], %7 {strides = array<i32>} : memref<32x128xf32, #tpu.memory_space<vmem>>, vector<32x128xf32>,
      %c0_10 = arith.constant 0 : index
      %c0_11 = arith.constant 0 : index
      %11 = vector.load %arg9[%c0_10, %c0_11] : memref<32x128xf32, #tpu.memory_space<vmem>>, vector<32x128xf32>
      tpu.vector_store %arg9[%c0_10, %c0_11], %9 {strides = array<i32>} : memref<32x128xf32, #tpu.memory_space<vmem>>, vector<32x128xf32>,
      %c0_12 = arith.constant 0 : index
      %c0_13 = arith.constant 0 : index
      %c0_14 = arith.constant 0 : index
      %12 = vector.load %arg6[%c0_12, %c0_13, %c0_14] : memref<1x32x128xf32, #tpu.memory_space<vmem>>, vector<1x32x128xf32>
      %13 = vector.shape_cast %12 : vector<1x32x128xf32> to vector<32x128xf32>
      %14 = vector.shape_cast %7 : vector<32x128xf32> to vector<1x32x128xf32>
      tpu.vector_store %arg6[%c0_12, %c0_13, %c0_14], %14 {strides = array<i32>} : memref<1x32x128xf32, #tpu.memory_space<vmem>>, vector<1x32x128xf32>,
      %c0_15 = arith.constant 0 : index
      %c0_16 = arith.constant 0 : index
      %c0_17 = arith.constant 0 : index
      %15 = vector.load %arg7[%c0_15, %c0_16, %c0_17] : memref<1x32x128xf32, #tpu.memory_space<vmem>>, vector<1x32x128xf32>
      %16 = vector.shape_cast %15 : vector<1x32x128xf32> to vector<32x128xf32>
      %17 = vector.shape_cast %9 : vector<32x128xf32> to vector<1x32x128xf32>
      tpu.vector_store %arg7[%c0_15, %c0_16, %c0_17], %17 {strides = array<i32>} : memref<1x32x128xf32, #tpu.memory_space<vmem>>, vector<1x32x128xf32>,
    } else {
    }
    %c0_i32_1 = arith.constant 0 : i32
    %3 = arith.cmpi sgt, %arg1, %c0_i32_1 : i32
    %4 = arith.extui %3 : i1 to i32
    %c0_i32_2 = arith.constant 0 : i32
    %5 = arith.cmpi ne, %4, %c0_i32_2 : i32
    scf.if %5 {
      %c0 = arith.constant 0 : index
      %c0_3 = arith.constant 0 : index
      %c0_4 = arith.constant 0 : index
      %6 = vector.load %arg2[%c0, %c0_3, %c0_4] : memref<1x32x128xf32, #tpu.memory_space<vmem>>, vector<1x32x128xf32>
      %7 = vector.shape_cast %6 : vector<1x32x128xf32> to vector<32x128xf32>
      %c0_5 = arith.constant 0 : index
      %c0_6 = arith.constant 0 : index
      %8 = vector.load %arg4[%c0_5, %c0_6] : memref<32x32xf32, #tpu.memory_space<vmem>>, vector<32x32xf32>
      %c0_7 = arith.constant 0 : index
      %c0_8 = arith.constant 0 : index
      %9 = vector.load %arg8[%c0_7, %c0_8] : memref<32x128xf32, #tpu.memory_space<vmem>>, vector<32x128xf32>
      %cst = arith.constant dense<0.000000e+00> : vector<32x128xf32>
      %10 = tpu.matmul %8, %9, %cst {dimension_numbers = #tpu.dot_dimension_numbers<[1], [0], [0], [1], [0, 0, 1, 1], [], []>} : vector<32x32xf32>, vector<32x128xf32>, vector<32x128xf32> -> vector<32x128xf32>
      %11 = arith.addf %7, %10 : vector<32x128xf32>
      %cst_9 = arith.constant 0.000000e+00 : f32
      %12 = vector.broadcast %cst_9 : f32 to vector<32x128xf32>
      %13 = arith.maximumf %11, %12 : vector<32x128xf32>
      %c0_10 = arith.constant 0 : index
      %c0_11 = arith.constant 0 : index
      %c0_12 = arith.constant 0 : index
      %14 = vector.load %arg3[%c0_10, %c0_11, %c0_12] : memref<1x32x128xf32, #tpu.memory_space<vmem>>, vector<1x32x128xf32>
      %15 = vector.shape_cast %14 : vector<1x32x128xf32> to vector<32x128xf32>
      %c0_13 = arith.constant 0 : index
      %c0_14 = arith.constant 0 : index
      %16 = vector.load %arg5[%c0_13, %c0_14] : memref<32x32xf32, #tpu.memory_space<vmem>>, vector<32x32xf32>
      %c0_15 = arith.constant 0 : index
      %c0_16 = arith.constant 0 : index
      %17 = vector.load %arg9[%c0_15, %c0_16] : memref<32x128xf32, #tpu.memory_space<vmem>>, vector<32x128xf32>
      %cst_17 = arith.constant dense<0.000000e+00> : vector<32x128xf32>
      %18 = tpu.matmul %16, %17, %cst_17 {dimension_numbers = #tpu.dot_dimension_numbers<[1], [0], [0], [1], [0, 0, 1, 1], [], []>} : vector<32x32xf32>, vector<32x128xf32>, vector<32x128xf32> -> vector<32x128xf32>
      %19 = arith.addf %15, %18 : vector<32x128xf32>
      %cst_18 = arith.constant 0.000000e+00 : f32
      %20 = vector.broadcast %cst_18 : f32 to vector<32x128xf32>
      %21 = arith.maximumf %19, %20 : vector<32x128xf32>
      %c0_19 = arith.constant 0 : index
      %c0_20 = arith.constant 0 : index
      %22 = vector.load %arg8[%c0_19, %c0_20] : memref<32x128xf32, #tpu.memory_space<vmem>>, vector<32x128xf32>
      tpu.vector_store %arg8[%c0_19, %c0_20], %13 {strides = array<i32>} : memref<32x128xf32, #tpu.memory_space<vmem>>, vector<32x128xf32>,
      %c0_21 = arith.constant 0 : index
      %c0_22 = arith.constant 0 : index
      %23 = vector.load %arg9[%c0_21, %c0_22] : memref<32x128xf32, #tpu.memory_space<vmem>>, vector<32x128xf32>
      tpu.vector_store %arg9[%c0_21, %c0_22], %21 {strides = array<i32>} : memref<32x128xf32, #tpu.memory_space<vmem>>, vector<32x128xf32>,
      %c0_23 = arith.constant 0 : index
      %c0_24 = arith.constant 0 : index
      %c0_25 = arith.constant 0 : index
      %24 = vector.load %arg6[%c0_23, %c0_24, %c0_25] : memref<1x32x128xf32, #tpu.memory_space<vmem>>, vector<1x32x128xf32>
      %25 = vector.shape_cast %24 : vector<1x32x128xf32> to vector<32x128xf32>
      %26 = vector.shape_cast %13 : vector<32x128xf32> to vector<1x32x128xf32>
      tpu.vector_store %arg6[%c0_23, %c0_24, %c0_25], %26 {strides = array<i32>} : memref<1x32x128xf32, #tpu.memory_space<vmem>>, vector<1x32x128xf32>,
      %c0_26 = arith.constant 0 : index
      %c0_27 = arith.constant 0 : index
      %c0_28 = arith.constant 0 : index
      %27 = vector.load %arg7[%c0_26, %c0_27, %c0_28] : memref<1x32x128xf32, #tpu.memory_space<vmem>>, vector<1x32x128xf32>
      %28 = vector.shape_cast %27 : vector<1x32x128xf32> to vector<32x128xf32>
      %29 = vector.shape_cast %21 : vector<32x128xf32> to vector<1x32x128xf32>
      tpu.vector_store %arg7[%c0_26, %c0_27, %c0_28], %29 {strides = array<i32>} : memref<1x32x128xf32, #tpu.memory_space<vmem>>, vector<1x32x128xf32>,
    } else {
    }
    return
  }
  func.func @transform_0(%arg0: i32, %arg1: i32) -> (i32, i32, i32) {
    %c0_i32 = arith.constant 0 : i32
    %c0_i32_0 = arith.constant 0 : i32
    return %arg1, %c0_i32, %arg0 : i32, i32, i32
  }
  func.func @transform_1(%arg0: i32, %arg1: i32) -> (i32, i32, i32) {
    %c7_i32 = arith.constant 7 : i32
    %0 = arith.subi %c7_i32, %arg1 : i32
    %c0_i32 = arith.constant 0 : i32
    %c0_i32_0 = arith.constant 0 : i32
    return %0, %c0_i32, %arg0 : i32, i32, i32
  }
  func.func @transform_2(%arg0: i32, %arg1: i32) -> (i32, i32) {
    %c0_i32 = arith.constant 0 : i32
    %c0_i32_0 = arith.constant 0 : i32
    %c0_i32_1 = arith.constant 0 : i32
    return %c0_i32, %c0_i32_0 : i32, i32
  }
  func.func @transform_3(%arg0: i32, %arg1: i32) -> (i32, i32) {
    %c0_i32 = arith.constant 0 : i32
    %c0_i32_0 = arith.constant 0 : i32
    %c0_i32_1 = arith.constant 0 : i32
    return %c0_i32, %c0_i32_0 : i32, i32
  }
  func.func @transform_4(%arg0: i32, %arg1: i32) -> (i32, i32, i32) {
    %c0_i32 = arith.constant 0 : i32
    %c0_i32_0 = arith.constant 0 : i32
    return %arg1, %c0_i32, %arg0 : i32, i32, i32
  }
  func.func @transform_5(%arg0: i32, %arg1: i32) -> (i32, i32, i32) {
    %c7_i32 = arith.constant 7 : i32
    %0 = arith.subi %c7_i32, %arg1 : i32
    %c0_i32 = arith.constant 0 : i32
    %c0_i32_0 = arith.constant 0 : i32
    return %0, %c0_i32, %arg0 : i32, i32, i32
  }
}

module attributes {stable_mosaic.version = 11 : i64} {
  func.func @_pair_sweep_kernel(%arg0: i32, %arg1: i32, %arg2: memref<1x32x128xf32, #tpu.memory_space<vmem>>, %arg3: memref<1x32x128xf32, #tpu.memory_space<vmem>>, %arg4: memref<32x32xf32, #tpu.memory_space<vmem>>, %arg5: memref<32x32xf32, #tpu.memory_space<vmem>>, %arg6: memref<1x32x128xf32, #tpu.memory_space<vmem>>, %arg7: memref<1x32x128xf32, #tpu.memory_space<vmem>>, %arg8: memref<1x32x128xf32, #tpu.memory_space<vmem>>, %arg9: memref<1x32x128xf32, #tpu.memory_space<vmem>>, %arg10: memref<32x128xf32, #tpu.memory_space<vmem>>, %arg11: memref<32x128xf32, #tpu.memory_space<vmem>>) attributes {dimension_semantics = [#tpu.dimension_semantics<parallel>, #tpu.dimension_semantics<arbitrary>], iteration_bounds = array<i64: 1, 8>, scalar_prefetch = 0 : i64, scratch_operands = 2 : i64, tpu.core_type = #tpu.core_type<tc>, window_params = [{transform_indices = @transform_0, window_bounds = array<i64: 1, 32, 128>}, {transform_indices = @transform_1, window_bounds = array<i64: 1, 32, 128>}, {pipeline_mode = #tpu.pipeline_mode<synchronous>, transform_indices = @transform_2, window_bounds = array<i64: 32, 32>}, {pipeline_mode = #tpu.pipeline_mode<synchronous>, transform_indices = @transform_3, window_bounds = array<i64: 32, 32>}, {transform_indices = @transform_4, window_bounds = array<i64: 1, 32, 128>}, {transform_indices = @transform_5, window_bounds = array<i64: 1, 32, 128>}, {transform_indices = @transform_6, window_bounds = array<i64: 1, 32, 128>}, {transform_indices = @transform_7, window_bounds = array<i64: 1, 32, 128>}]} {
    %c0_i32 = arith.constant 0 : i32
    %0 = arith.cmpi eq, %arg1, %c0_i32 : i32
    %1 = arith.extui %0 : i1 to i32
    %c0_i32_0 = arith.constant 0 : i32
    %2 = arith.cmpi ne, %1, %c0_i32_0 : i32
    scf.if %2 {
      %c0 = arith.constant 0 : index
      %c0_3 = arith.constant 0 : index
      %c0_4 = arith.constant 0 : index
      %6 = vector.load %arg2[%c0, %c0_3, %c0_4] : memref<1x32x128xf32, #tpu.memory_space<vmem>>, vector<1x32x128xf32>
      %7 = vector.shape_cast %6 : vector<1x32x128xf32> to vector<32x128xf32>
      %c0_5 = arith.constant 0 : index
      %c0_6 = arith.constant 0 : index
      %c0_7 = arith.constant 0 : index
      %8 = vector.load %arg3[%c0_5, %c0_6, %c0_7] : memref<1x32x128xf32, #tpu.memory_space<vmem>>, vector<1x32x128xf32>
      %9 = vector.shape_cast %8 : vector<1x32x128xf32> to vector<32x128xf32>
      %c0_8 = arith.constant 0 : index
      %c0_9 = arith.constant 0 : index
      %10 = vector.load %arg10[%c0_8, %c0_9] : memref<32x128xf32, #tpu.memory_space<vmem>>, vector<32x128xf32>
      tpu.vector_store %arg10[%c0_8, %c0_9], %7 {strides = array<i32>} : memref<32x128xf32, #tpu.memory_space<vmem>>, vector<32x128xf32>,
      %c0_10 = arith.constant 0 : index
      %c0_11 = arith.constant 0 : index
      %11 = vector.load %arg11[%c0_10, %c0_11] : memref<32x128xf32, #tpu.memory_space<vmem>>, vector<32x128xf32>
      tpu.vector_store %arg11[%c0_10, %c0_11], %9 {strides = array<i32>} : memref<32x128xf32, #tpu.memory_space<vmem>>, vector<32x128xf32>,
      %c0_12 = arith.constant 0 : index
      %c0_13 = arith.constant 0 : index
      %c0_14 = arith.constant 0 : index
      %12 = vector.load %arg6[%c0_12, %c0_13, %c0_14] : memref<1x32x128xf32, #tpu.memory_space<vmem>>, vector<1x32x128xf32>
      %13 = vector.shape_cast %12 : vector<1x32x128xf32> to vector<32x128xf32>
      %14 = arith.addf %7, %13 : vector<32x128xf32>
      %c0_15 = arith.constant 0 : index
      %c0_16 = arith.constant 0 : index
      %c0_17 = arith.constant 0 : index
      %15 = vector.load %arg8[%c0_15, %c0_16, %c0_17] : memref<1x32x128xf32, #tpu.memory_space<vmem>>, vector<1x32x128xf32>
      %16 = vector.shape_cast %15 : vector<1x32x128xf32> to vector<32x128xf32>
      %17 = vector.shape_cast %14 : vector<32x128xf32> to vector<1x32x128xf32>
      tpu.vector_store %arg8[%c0_15, %c0_16, %c0_17], %17 {strides = array<i32>} : memref<1x32x128xf32, #tpu.memory_space<vmem>>, vector<1x32x128xf32>,
      %c0_18 = arith.constant 0 : index
      %c0_19 = arith.constant 0 : index
      %c0_20 = arith.constant 0 : index
      %18 = vector.load %arg7[%c0_18, %c0_19, %c0_20] : memref<1x32x128xf32, #tpu.memory_space<vmem>>, vector<1x32x128xf32>
      %19 = vector.shape_cast %18 : vector<1x32x128xf32> to vector<32x128xf32>
      %20 = arith.addf %9, %19 : vector<32x128xf32>
      %c0_21 = arith.constant 0 : index
      %c0_22 = arith.constant 0 : index
      %c0_23 = arith.constant 0 : index
      %21 = vector.load %arg9[%c0_21, %c0_22, %c0_23] : memref<1x32x128xf32, #tpu.memory_space<vmem>>, vector<1x32x128xf32>
      %22 = vector.shape_cast %21 : vector<1x32x128xf32> to vector<32x128xf32>
      %23 = vector.shape_cast %20 : vector<32x128xf32> to vector<1x32x128xf32>
      tpu.vector_store %arg9[%c0_21, %c0_22, %c0_23], %23 {strides = array<i32>} : memref<1x32x128xf32, #tpu.memory_space<vmem>>, vector<1x32x128xf32>,
    } else {
    }
    %c0_i32_1 = arith.constant 0 : i32
    %3 = arith.cmpi sgt, %arg1, %c0_i32_1 : i32
    %4 = arith.extui %3 : i1 to i32
    %c0_i32_2 = arith.constant 0 : i32
    %5 = arith.cmpi ne, %4, %c0_i32_2 : i32
    scf.if %5 {
      %c0 = arith.constant 0 : index
      %c0_3 = arith.constant 0 : index
      %c0_4 = arith.constant 0 : index
      %6 = vector.load %arg2[%c0, %c0_3, %c0_4] : memref<1x32x128xf32, #tpu.memory_space<vmem>>, vector<1x32x128xf32>
      %7 = vector.shape_cast %6 : vector<1x32x128xf32> to vector<32x128xf32>
      %c0_5 = arith.constant 0 : index
      %c0_6 = arith.constant 0 : index
      %8 = vector.load %arg4[%c0_5, %c0_6] : memref<32x32xf32, #tpu.memory_space<vmem>>, vector<32x32xf32>
      %c0_7 = arith.constant 0 : index
      %c0_8 = arith.constant 0 : index
      %9 = vector.load %arg10[%c0_7, %c0_8] : memref<32x128xf32, #tpu.memory_space<vmem>>, vector<32x128xf32>
      %cst = arith.constant dense<0.000000e+00> : vector<32x128xf32>
      %10 = tpu.matmul %8, %9, %cst {dimension_numbers = #tpu.dot_dimension_numbers<[1], [0], [0], [1], [0, 0, 1, 1], [], []>} : vector<32x32xf32>, vector<32x128xf32>, vector<32x128xf32> -> vector<32x128xf32>
      %11 = arith.addf %7, %10 : vector<32x128xf32>
      %cst_9 = arith.constant 0.000000e+00 : f32
      %12 = vector.broadcast %cst_9 : f32 to vector<32x128xf32>
      %13 = arith.maximumf %11, %12 : vector<32x128xf32>
      %c0_10 = arith.constant 0 : index
      %c0_11 = arith.constant 0 : index
      %c0_12 = arith.constant 0 : index
      %14 = vector.load %arg3[%c0_10, %c0_11, %c0_12] : memref<1x32x128xf32, #tpu.memory_space<vmem>>, vector<1x32x128xf32>
      %15 = vector.shape_cast %14 : vector<1x32x128xf32> to vector<32x128xf32>
      %c0_13 = arith.constant 0 : index
      %c0_14 = arith.constant 0 : index
      %16 = vector.load %arg5[%c0_13, %c0_14] : memref<32x32xf32, #tpu.memory_space<vmem>>, vector<32x32xf32>
      %c0_15 = arith.constant 0 : index
      %c0_16 = arith.constant 0 : index
      %17 = vector.load %arg11[%c0_15, %c0_16] : memref<32x128xf32, #tpu.memory_space<vmem>>, vector<32x128xf32>
      %cst_17 = arith.constant dense<0.000000e+00> : vector<32x128xf32>
      %18 = tpu.matmul %16, %17, %cst_17 {dimension_numbers = #tpu.dot_dimension_numbers<[1], [0], [0], [1], [0, 0, 1, 1], [], []>} : vector<32x32xf32>, vector<32x128xf32>, vector<32x128xf32> -> vector<32x128xf32>
      %19 = arith.addf %15, %18 : vector<32x128xf32>
      %cst_18 = arith.constant 0.000000e+00 : f32
      %20 = vector.broadcast %cst_18 : f32 to vector<32x128xf32>
      %21 = arith.maximumf %19, %20 : vector<32x128xf32>
      %c0_19 = arith.constant 0 : index
      %c0_20 = arith.constant 0 : index
      %22 = vector.load %arg10[%c0_19, %c0_20] : memref<32x128xf32, #tpu.memory_space<vmem>>, vector<32x128xf32>
      tpu.vector_store %arg10[%c0_19, %c0_20], %13 {strides = array<i32>} : memref<32x128xf32, #tpu.memory_space<vmem>>, vector<32x128xf32>,
      %c0_21 = arith.constant 0 : index
      %c0_22 = arith.constant 0 : index
      %23 = vector.load %arg11[%c0_21, %c0_22] : memref<32x128xf32, #tpu.memory_space<vmem>>, vector<32x128xf32>
      tpu.vector_store %arg11[%c0_21, %c0_22], %21 {strides = array<i32>} : memref<32x128xf32, #tpu.memory_space<vmem>>, vector<32x128xf32>,
      %c0_23 = arith.constant 0 : index
      %c0_24 = arith.constant 0 : index
      %c0_25 = arith.constant 0 : index
      %24 = vector.load %arg6[%c0_23, %c0_24, %c0_25] : memref<1x32x128xf32, #tpu.memory_space<vmem>>, vector<1x32x128xf32>
      %25 = vector.shape_cast %24 : vector<1x32x128xf32> to vector<32x128xf32>
      %26 = arith.addf %13, %25 : vector<32x128xf32>
      %c0_26 = arith.constant 0 : index
      %c0_27 = arith.constant 0 : index
      %c0_28 = arith.constant 0 : index
      %27 = vector.load %arg8[%c0_26, %c0_27, %c0_28] : memref<1x32x128xf32, #tpu.memory_space<vmem>>, vector<1x32x128xf32>
      %28 = vector.shape_cast %27 : vector<1x32x128xf32> to vector<32x128xf32>
      %29 = vector.shape_cast %26 : vector<32x128xf32> to vector<1x32x128xf32>
      tpu.vector_store %arg8[%c0_26, %c0_27, %c0_28], %29 {strides = array<i32>} : memref<1x32x128xf32, #tpu.memory_space<vmem>>, vector<1x32x128xf32>,
      %c0_29 = arith.constant 0 : index
      %c0_30 = arith.constant 0 : index
      %c0_31 = arith.constant 0 : index
      %30 = vector.load %arg7[%c0_29, %c0_30, %c0_31] : memref<1x32x128xf32, #tpu.memory_space<vmem>>, vector<1x32x128xf32>
      %31 = vector.shape_cast %30 : vector<1x32x128xf32> to vector<32x128xf32>
      %32 = arith.addf %21, %31 : vector<32x128xf32>
      %c0_32 = arith.constant 0 : index
      %c0_33 = arith.constant 0 : index
      %c0_34 = arith.constant 0 : index
      %33 = vector.load %arg9[%c0_32, %c0_33, %c0_34] : memref<1x32x128xf32, #tpu.memory_space<vmem>>, vector<1x32x128xf32>
      %34 = vector.shape_cast %33 : vector<1x32x128xf32> to vector<32x128xf32>
      %35 = vector.shape_cast %32 : vector<32x128xf32> to vector<1x32x128xf32>
      tpu.vector_store %arg9[%c0_32, %c0_33, %c0_34], %35 {strides = array<i32>} : memref<1x32x128xf32, #tpu.memory_space<vmem>>, vector<1x32x128xf32>,
    } else {
    }
    return
  }
  func.func @transform_0(%arg0: i32, %arg1: i32) -> (i32, i32, i32) {
    %c0_i32 = arith.constant 0 : i32
    %c0_i32_0 = arith.constant 0 : i32
    return %arg1, %c0_i32, %arg0 : i32, i32, i32
  }
  func.func @transform_1(%arg0: i32, %arg1: i32) -> (i32, i32, i32) {
    %c7_i32 = arith.constant 7 : i32
    %0 = arith.subi %c7_i32, %arg1 : i32
    %c0_i32 = arith.constant 0 : i32
    %c0_i32_0 = arith.constant 0 : i32
    return %0, %c0_i32, %arg0 : i32, i32, i32
  }
  func.func @transform_2(%arg0: i32, %arg1: i32) -> (i32, i32) {
    %c0_i32 = arith.constant 0 : i32
    %c0_i32_0 = arith.constant 0 : i32
    %c0_i32_1 = arith.constant 0 : i32
    return %c0_i32, %c0_i32_0 : i32, i32
  }
  func.func @transform_3(%arg0: i32, %arg1: i32) -> (i32, i32) {
    %c0_i32 = arith.constant 0 : i32
    %c0_i32_0 = arith.constant 0 : i32
    %c0_i32_1 = arith.constant 0 : i32
    return %c0_i32, %c0_i32_0 : i32, i32
  }
  func.func @transform_4(%arg0: i32, %arg1: i32) -> (i32, i32, i32) {
    %c0_i32 = arith.constant 0 : i32
    %c0_i32_0 = arith.constant 0 : i32
    return %arg1, %c0_i32, %arg0 : i32, i32, i32
  }
  func.func @transform_5(%arg0: i32, %arg1: i32) -> (i32, i32, i32) {
    %c7_i32 = arith.constant 7 : i32
    %0 = arith.subi %c7_i32, %arg1 : i32
    %c0_i32 = arith.constant 0 : i32
    %c0_i32_0 = arith.constant 0 : i32
    return %0, %c0_i32, %arg0 : i32, i32, i32
  }
  func.func @transform_6(%arg0: i32, %arg1: i32) -> (i32, i32, i32) {
    %c0_i32 = arith.constant 0 : i32
    %c0_i32_0 = arith.constant 0 : i32
    return %arg1, %c0_i32, %arg0 : i32, i32, i32
  }
  func.func @transform_7(%arg0: i32, %arg1: i32) -> (i32, i32, i32) {
    %c7_i32 = arith.constant 7 : i32
    %0 = arith.subi %c7_i32, %arg1 : i32
    %c0_i32 = arith.constant 0 : i32
    %c0_i32_0 = arith.constant 0 : i32
    return %0, %c0_i32, %arg0 : i32, i32, i32
  }
}

</mosaic_0001>

<bundles_post_ra>
// kernel: uag_forward.3
= control target key start
LH: loop header
LB: loop body
LE: loop exit
PB: predicated region body
PF: predicated region fallthrough
CT: control target
= control target key end

     0   :  { %s906_s18 = smov 0   ;;  %s908_s19 = smov 0   ;;  %s1024_s0 = inlined_call_operand.vmem [shape: f32[8,32,128], index: 0, kind: input, shape index: {}]   ;;  %s1025_s1 = inlined_call_operand.vmem [shape: f32[8,32,128], index: 1, kind: input, shape index: {}]   ;;  %s1026_s2 = inlined_call_operand.vmem [shape: f32[32,32], index: 2, kind: input, shape index: {}]   ;;  %s1027_s3 = inlined_call_operand.vmem [shape: f32[32,32], index: 3, kind: input, shape index: {}]   ;;  %s1028_s4 = inlined_call_operand.vmem [shape: f32[8,32,128], index: 4, kind: output, shape index: {0}]   ;;  %s1029_s5 = inlined_call_operand.vmem [shape: f32[8,32,128], index: 5, kind: output, shape index: {1}]  }
   0x1   :  { %s910_s20 = smov 0  }
   0x2 LB: > { %s25_s21 = sadd.s32 1, %s870_s19  ;;  %p759_p0 = scmp.ge.s32.totalorder %s874_s20, 1  ;;  %s874_s20 = sphi %s910_s20, %s16_s20   ;;  %s870_s19 = sphi %s908_s19, %s1031_s19   ;;  %s866_s18 = sphi %s906_s18, %s1030_s18  }
   0x3   : > { %p26_p1 = scmp.ge.s32.totalorder %s25_s21, 8  ;;  %p232_p2 = scmp.lt.s32.totalorder %s874_s20, 9 }
   0x5   : > { %s1033_s21 = smov (%p26_p1, %s25_s21), 0  ;;  %p233_p3 = pnand %p759_p0, %p232_p2 }
   0x6   : > { %p284_p4 = scmp.lt.s32.totalorder (!%p233_p3), %s866_s18, 7  ;;  %s292_s22 = ssub.s32 (!%p233_p3), 7, %s866_s18 }
   0x7   : > { %236 = sbr.rel (%p233_p3) target bundleno = 249 (0xf9), region = 36  ;;  %p293_p5 = scmp.lt.s32.totalorder (!%p233_p3), %s292_s22, 7 }
   0x8   : > { %p768_p6 = scmp.ne.s32.totalorder (!%p233_p3), %s866_s18, 0 }
   0xc   : > { %s285_s23 = scalar_select %p284_p4, %s866_s18, 7 }
   0xd   : > { %s1035_s22 = smov (!%p293_p5, %s292_s22), 7  ;;  %323 = sbr.rel (%p768_p6) target bundleno = 27 (0x1b), region = 40 }
   0xe   : > { %s780_s24 = sshll.u32 %s285_s23, 5  ;;  %s781_s28 = sshll.u32 %s1035_s22, 5 }
   0xf   : > { %s932_s27 = scalar_lea.vmem %s1024_s0, %s780_s24  ;;  %s937_s6 = scalar_lea.vmem %s1025_s1, %s781_s28 }
  0x10   : > { %s942_s9 = scalar_lea.vmem %s1028_s4, %s780_s24  ;;  %s947_s12 = scalar_lea.vmem %s1029_s5, %s781_s28 }
  0x12   : > { %v324_v0 = vld [vmem:[%s932_s27] sm:$0xff]  ;;  %v325_v1 = vld [vmem:[%s932_s27 + $0x8] sm:$0xff]  ;;  %v326_v2 = vld [vmem:[%s932_s27 + $0x10] sm:$0xff] }
  0x13   : > { %332 = vst [vmem:[#allocation2 + $0x10] sm:$0xff] %v324_v0  ;;  %340 = vst [vmem:[%s942_s9] sm:$0xff] %v324_v0  ;;  %v327_v3 = vld [vmem:[%s932_s27 + $0x18] sm:$0xff]  ;;  %v328_v4 = vld [vmem:[%s937_s6] sm:$0xff] }
  0x14   : > { %333 = vst [vmem:[#allocation2] sm:$0xff] %v325_v1  ;;  %341 = vst [vmem:[%s942_s9 + $0x8] sm:$0xff] %v325_v1  ;;  %v329_v5 = vld [vmem:[%s937_s6 + $0x8] sm:$0xff]  ;;  %v330_v6 = vld [vmem:[%s937_s6 + $0x10] sm:$0xff] }
  0x15   : > { %334 = vst [vmem:[#allocation2 + $0x18] sm:$0xff] %v326_v2  ;;  %342 = vst [vmem:[%s942_s9 + $0x10] sm:$0xff] %v326_v2  ;;  %v331_v7 = vld [vmem:[%s937_s6 + $0x18] sm:$0xff] }
  0x16   : > { %335 = vst [vmem:[#allocation2 + $0x8] sm:$0xff] %v327_v3  ;;  %343 = vst [vmem:[%s942_s9 + $0x18] sm:$0xff] %v327_v3 }
  0x17   : > { %336 = vst [vmem:[#allocation3] sm:$0xff] %v328_v4  ;;  %344 = vst [vmem:[%s947_s12] sm:$0xff] %v328_v4 }
  0x18   : > { %337 = vst [vmem:[#allocation3 + $0x18] sm:$0xff] %v329_v5  ;;  %345 = vst [vmem:[%s947_s12 + $0x8] sm:$0xff] %v329_v5 }
  0x19   : > { %338 = vst [vmem:[#allocation3 + $0x8] sm:$0xff] %v330_v6  ;;  %346 = vst [vmem:[%s947_s12 + $0x10] sm:$0xff] %v330_v6 }
  0x1a   : > { %339 = vst [vmem:[#allocation3 + $0x10] sm:$0xff] %v331_v7  ;;  %347 = vst [vmem:[%s947_s12 + $0x18] sm:$0xff] %v331_v7 }
  0x1b PF: > { %p769_p7 = scmp.le.s32.totalorder %s866_s18, 0 }
  0x1d   : > { %351 = sbr.rel (%p769_p7) target bundleno = 249 (0xf9), region = 44 }
  0x22   : > { %v363_v8 = vld [vmem:[#allocation2 + $0x8] sm:$0xff]  ;;  %v481_v9 = vld [vmem:[#allocation3 + $0x10] sm:$0xff]  ;;  %v362_v10 = vld [vmem:[#allocation2 + $0x18] sm:$0xff]  ;;  %vm364_vm0 = vcmask 261120  }
  0x23   : > { %800 = vmatprep.subr.mxu0 %v363_v8  ;;  %814 = vmatprep.subr.mxu1 %v481_v9  ;;  %v480_v11 = vld [vmem:[#allocation3 + $0x8] sm:$0xff]  ;;  %v361_v12 = vld [vmem:[#allocation2] sm:$0xff]  ;;  %v479_v13 = vld [vmem:[#allocation3 + $0x18] sm:$0xff] }
  0x24   : > { %801 = vmatpush3.msra.mxu0 %v363_v8  ;;  %815 = vmatpush3.msra.mxu1 %v481_v9  ;;  %v360_v14 = vld [vmem:[#allocation2 + $0x10] sm:$0xff]  ;;  %v478_v15 = vld [vmem:[#allocation3] sm:$0xff]  ;;  %v357_v18 = vld [vmem:[%s1026_s2 + $0x8] sm:$0xff] }
  0x25   : > { %802 = vmatprep.subr.mxu0 %v362_v10  ;;  %816 = vmatprep.subr.mxu1 %v480_v11  ;;  %v356_v16 = vld [vmem:[%s1026_s2] sm:$0xff]  ;;  %v475_v19 = vld [vmem:[%s1027_s3 + $0x8] sm:$0xff]  ;;  %v358_v20 = vld [vmem:[%s1026_s2 + $0x10] sm:$0xff] }
  0x26   : > { %803 = vmatpush3.msra.mxu0 %v362_v10  ;;  %817 = vmatpush3.msra.mxu1 %v480_v11  ;;  %v474_v17 = vld [vmem:[%s1027_s3] sm:$0xff]  ;;  %v476_v21 = vld [vmem:[%s1027_s3 + $0x10] sm:$0xff]  ;;  %v359_v22 = vld [vmem:[%s1026_s2 + $0x18] sm:$0xff] }
  0x27   : > { %804 = vmatprep.subr.mxu0 %v361_v12  ;;  %818 = vmatprep.subr.mxu1 %v479_v13  ;;  %v477_v23 = vld [vmem:[%s1027_s3 + $0x18] sm:$0xff]  ;;  %v353_v24 = vld [vmem:[%s932_s27 + $0x8] sm:$0xff]  ;;  %v352_v28 = vld [vmem:[%s932_s27] sm:$0xff] }
  0x28   : > { %805 = vmatpush3.msra.mxu0 %v361_v12  ;;  %819 = vmatpush3.msra.mxu1 %v479_v13  ;;  %v471_v25 = vld [vmem:[%s937_s6 + $0x8] sm:$0xff]  ;;  %v470_v29 = vld [vmem:[%s937_s6] sm:$0xff]  ;;  %v355_v34 = vld [vmem:[%s932_s27 + $0x18] sm:$0xff] }
  0x29   : > { %806 = vmatprep.subr.mxu0 %v360_v14  ;;  %820 = vmatprep.subr.mxu1 %v478_v15  ;;  %v473_v35 = vld [vmem:[%s937_s6 + $0x18] sm:$0xff]  ;;  %v354_v42 = vld [vmem:[%s932_s27 + $0x10] sm:$0xff] }
  0x2a   : > { %807 = vmatpush3.msra.mxu0 %v360_v14  ;;  %808 = vmatprep.mubr.msk.f32.mxu0 %vm364_vm0, %v356_v16  ;;  %v472_v43 = vld [vmem:[%s937_s6 + $0x10] sm:$0xff] }
  0x2b   : > { %821 = vmatpush3.msra.mxu1 %v478_v15  ;;  %822 = vmatprep.mubr.msk.f32.mxu1 %vm364_vm0, %v474_v17 }
  0x2c   : > { %809 = vmatmul.mubr.msk.f32.vlgmr.msra.gmra.mxu0 %vm364_vm0, %v357_v18  ;;  %823 = vmatmul.mubr.msk.f32.vlgmr.msra.gmra.mxu1 %vm364_vm0, %v475_v19 }
  0x2d   : > { %811 = vmatprep.mubr.msk.f32.mxu0 %vm364_vm0, %v358_v20  ;;  %825 = vmatprep.mubr.msk.f32.mxu1 %vm364_vm0, %v476_v21 }
  0x30   : > { %812 = vmatmul.mubr.msk.f32.gmra.mxu0 %vm364_vm0, %v359_v22  ;;  %826 = vmatmul.mubr.msk.f32.gmra.mxu1 %vm364_vm0, %v477_v23 }
  0xec   : > { %v810_v26 = vpop.f32.mrf.mxu0  ;;  %v824_v27 = vpop.f32.mrf.mxu1 }
  0xed   : > { %v463_v30 = vadd.f32 %v810_v26, %v353_v24  ;;  %v580_v31 = vadd.f32 %v824_v27, %v471_v25 }
  0xee   : > { %v443_v32 = vpop.f32.mrf.mxu0  ;;  %v560_v33 = vpop.f32.mrf.mxu1 }
  0xef   : > { %v467_v36 = vmax.f32 %v463_v30, 0.0  ;;  %v584_v37 = vmax.f32 %v580_v31, 0.0  ;;  %v462_v38 = vadd.f32 %v443_v32, %v352_v28  ;;  %v579_v39 = vadd.f32 %v560_v33, %v470_v29 }
  0xf0   : > { %v813_v40 = vpop.f32.mrf.mxu0  ;;  %v827_v41 = vpop.f32.mrf.mxu1 }
  0xf1   : > { %588 = vst [vmem:[#allocation2] sm:$0xff] %v467_v36  ;;  %596 = vst [vmem:[%s942_s9 + $0x8] sm:$0xff] %v467_v36  ;;  %v466_v44 = vmax.f32 %v462_v38, 0.0  ;;  %v583_v45 = vmax.f32 %v579_v39, 0.0  ;;  %v465_v46 = vadd.f32 %v813_v40, %v355_v34  ;;  %v582_v47 = vadd.f32 %v827_v41, %v473_v35 }
  0xf2   : > { %592 = vst [vmem:[#allocation3 + $0x18] sm:$0xff] %v584_v37  ;;  %600 = vst [vmem:[%s947_s12 + $0x8] sm:$0xff] %v584_v37  ;;  %v453_v48 = vpop.f32.mrf.mxu0  ;;  %v570_v49 = vpop.f32.mrf.mxu1 }
  0xf3   : > { %587 = vst [vmem:[#allocation2 + $0x10] sm:$0xff] %v466_v44  ;;  %595 = vst [vmem:[%s942_s9] sm:$0xff] %v466_v44  ;;  %v469_v50 = vmax.f32 %v465_v46, 0.0  ;;  %v586_v51 = vmax.f32 %v582_v47, 0.0  ;;  %v464_v52 = vadd.f32 %v453_v48, %v354_v42  ;;  %v581_v53 = vadd.f32 %v570_v49, %v472_v43 }
  0xf4   : > { %591 = vst [vmem:[#allocation3] sm:$0xff] %v583_v45  ;;  %599 = vst [vmem:[%s947_s12] sm:$0xff] %v583_v45 }
  0xf5   : > { %590 = vst [vmem:[#allocation2 + $0x8] sm:$0xff] %v469_v50  ;;  %598 = vst [vmem:[%s942_s9 + $0x18] sm:$0xff] %v469_v50  ;;  %v468_v54 = vmax.f32 %v464_v52, 0.0  ;;  %v585_v55 = vmax.f32 %v581_v53, 0.0 }
  0xf6   : > { %594 = vst [vmem:[#allocation3 + $0x10] sm:$0xff] %v586_v51  ;;  %602 = vst [vmem:[%s947_s12 + $0x18] sm:$0xff] %v586_v51 }
  0xf7   : > { %589 = vst [vmem:[#allocation2 + $0x18] sm:$0xff] %v468_v54  ;;  %597 = vst [vmem:[%s942_s9 + $0x10] sm:$0xff] %v468_v54 }
  0xf8   : > { %593 = vst [vmem:[#allocation3 + $0x8] sm:$0xff] %v585_v55  ;;  %601 = vst [vmem:[%s947_s12 + $0x10] sm:$0xff] %v585_v55 }
  0xf9 PF: > { %s16_s20 = sadd.s32 1, %s874_s20   ;;  %s1030_s18 = smov %s870_s19 }
  0xfa   : > { %p13_p8 = scmp.ge.s32.totalorder %s16_s20, 10   ;;  %s1031_s19 = smov %s1033_s21 }
  0xfc   :  { %15 = sbr.rel (!%p13_p8) target bundleno = 2 (0x2), region = 89 }

// kernel: uag_forward.5
= control target key start
LH: loop header
LB: loop body
LE: loop exit
PB: predicated region body
PF: predicated region fallthrough
CT: control target
= control target key end

     0   :  { %s1113_s24 = smov 0   ;;  %s1115_s25 = smov 0   ;;  %s1257_s0 = inlined_call_operand.vmem [shape: f32[8,32,128], index: 0, kind: input, shape index: {}]   ;;  %s1258_s1 = inlined_call_operand.vmem [shape: f32[8,32,128], index: 1, kind: input, shape index: {}]   ;;  %s1259_s2 = inlined_call_operand.vmem [shape: f32[32,32], index: 2, kind: input, shape index: {}]   ;;  %s1260_s3 = inlined_call_operand.vmem [shape: f32[32,32], index: 3, kind: input, shape index: {}]   ;;  %s1261_s4 = inlined_call_operand.vmem [shape: f32[8,32,128], index: 4, kind: input, shape index: {}]   ;;  %s1262_s5 = inlined_call_operand.vmem [shape: f32[8,32,128], index: 5, kind: input, shape index: {}]   ;;  %s1263_s6 = inlined_call_operand.vmem [shape: f32[8,32,128], index: 6, kind: output, shape index: {0}]   ;;  %s1264_s7 = inlined_call_operand.vmem [shape: f32[8,32,128], index: 7, kind: output, shape index: {1}]  }
   0x1   :  { %s1117_s26 = smov 0  }
   0x2 LB: > { %s27_s27 = sadd.s32 1, %s1067_s25  ;;  %p950_p0 = scmp.ge.s32.totalorder %s1071_s26, 1  ;;  %s1071_s26 = sphi %s1117_s26, %s18_s26   ;;  %s1067_s25 = sphi %s1115_s25, %s1266_s25   ;;  %s1063_s24 = sphi %s1113_s24, %s1265_s24  }
   0x3   : > { %p28_p1 = scmp.ge.s32.totalorder %s27_s27, 8  ;;  %p316_p2 = scmp.lt.s32.totalorder %s1071_s26, 9 }
   0x5   : > { %s1268_s27 = smov (%p28_p1, %s27_s27), 0  ;;  %p317_p3 = pnand %p950_p0, %p316_p2 }
   0x6   : > { %p389_p4 = scmp.lt.s32.totalorder (!%p317_p3), %s1063_s24, 7  ;;  %s397_s28 = ssub.s32 (!%p317_p3), 7, %s1063_s24 }
   0x7   : > { %320 = sbr.rel (%p317_p3) target bundleno = 253 (0xfd), region = 44  ;;  %p398_p5 = scmp.lt.s32.totalorder (!%p317_p3), %s397_s28, 7 }
   0x8   : > { %p963_p6 = scmp.ne.s32.totalorder (!%p317_p3), %s1063_s24, 0 }
   0xc   : > { %s390_s29 = scalar_select %p389_p4, %s1063_s24, 7 }
   0xd   : > { %s1270_s28 = smov (!%p398_p5, %s397_s28), 7  ;;  %446 = sbr.rel (%p963_p6) target bundleno = 29 (0x1d), region = 48 }
   0xe   : > { %s975_s30 = sshll.u32 %s390_s29, 5  ;;  %s976_s11 = sshll.u32 %s1270_s28, 5 }
   0xf   : > { %s1139_s10 = scalar_lea.vmem %s1257_s0, %s975_s30  ;;  %s1144_s14 = scalar_lea.vmem %s1258_s1, %s976_s11 }
  0x10   : > { %s1149_s17 = scalar_lea.vmem %s1261_s4, %s975_s30  ;;  %s1154_s20 = scalar_lea.vmem %s1262_s5, %s976_s11 }
  0x11   : > { %s1159_s23 = scalar_lea.vmem %s1263_s6, %s975_s30  ;;  %s1164_s8 = scalar_lea.vmem %s1264_s7, %s976_s11 }
  0x12   : > { %v447_v0 = vld [vmem:[%s1139_s10] sm:$0xff]  ;;  %v448_v1 = vld [vmem:[%s1139_s10 + $0x8] sm:$0xff]  ;;  %v449_v2 = vld [vmem:[%s1139_s10 + $0x10] sm:$0xff] }
  0x13   : > { %455 = vst [vmem:[#allocation2 + $0x10] sm:$0xff] %v447_v0  ;;  %456 = vst [vmem:[#allocation2] sm:$0xff] %v448_v1  ;;  %v450_v3 = vld [vmem:[%s1139_s10 + $0x18] sm:$0xff]  ;;  %v451_v4 = vld [vmem:[%s1144_s14] sm:$0xff] }
  0x14   : > { %457 = vst [vmem:[#allocation2 + $0x18] sm:$0xff] %v449_v2  ;;  %v452_v5 = vld [vmem:[%s1144_s14 + $0x8] sm:$0xff]  ;;  %458 = vst [vmem:[#allocation2 + $0x8] sm:$0xff] %v450_v3  ;;  %v453_v6 = vld [vmem:[%s1144_s14 + $0x10] sm:$0xff] }
  0x15   : > { %459 = vst [vmem:[#allocation3] sm:$0xff] %v451_v4  ;;  %460 = vst [vmem:[#allocation3 + $0x18] sm:$0xff] %v452_v5  ;;  %v454_v7 = vld [vmem:[%s1144_s14 + $0x18] sm:$0xff]  ;;  %v463_v8 = vld [vmem:[%s1149_s17] sm:$0xff] }
  0x16   : > { %461 = vst [vmem:[#allocation3 + $0x8] sm:$0xff] %v453_v6  ;;  %462 = vst [vmem:[#allocation3 + $0x10] sm:$0xff] %v454_v7  ;;  %v467_v9 = vadd.f32 %v463_v8, %v447_v0  ;;  %v464_v10 = vld [vmem:[%s1149_s17 + $0x8] sm:$0xff]  ;;  %v465_v11 = vld [vmem:[%s1149_s17 + $0x10] sm:$0xff] }
  0x17   : > { %v466_v12 = vld [vmem:[%s1149_s17 + $0x18] sm:$0xff]  ;;  %v468_v13 = vadd.f32 %v464_v10, %v448_v1  ;;  %v469_v14 = vadd.f32 %v465_v11, %v449_v2  ;;  %v475_v16 = vld [vmem:[%s1154_s20] sm:$0xff]  ;;  %v476_v17 = vld [vmem:[%s1154_s20 + $0x8] sm:$0xff] }
  0x18   : > { %v470_v15 = vadd.f32 %v466_v12, %v450_v3  ;;  %v477_v18 = vld [vmem:[%s1154_s20 + $0x10] sm:$0xff]  ;;  %471 = vst [vmem:[%s1159_s23] sm:$0xff] %v467_v9  ;;  %v479_v19 = vadd.f32 %v475_v16, %v451_v4  ;;  %v480_v20 = vadd.f32 %v476_v17, %v452_v5  ;;  %v478_v22 = vld [vmem:[%s1154_s20 + $0x18] sm:$0xff] }
  0x19   : > { %v481_v21 = vadd.f32 %v477_v18, %v453_v6  ;;  %472 = vst [vmem:[%s1159_s23 + $0x8] sm:$0xff] %v468_v13  ;;  %473 = vst [vmem:[%s1159_s23 + $0x10] sm:$0xff] %v469_v14  ;;  %v482_v23 = vadd.f32 %v478_v22, %v454_v7 }
  0x1a   : > { %474 = vst [vmem:[%s1159_s23 + $0x18] sm:$0xff] %v470_v15  ;;  %483 = vst [vmem:[%s1164_s8] sm:$0xff] %v479_v19 }
  0x1b   : > { %484 = vst [vmem:[%s1164_s8 + $0x8] sm:$0xff] %v480_v20  ;;  %485 = vst [vmem:[%s1164_s8 + $0x10] sm:$0xff] %v481_v21 }
  0x1c   : > { %486 = vst [vmem:[%s1164_s8 + $0x18] sm:$0xff] %v482_v23 }
  0x1d PF: > { %p964_p7 = scmp.le.s32.totalorder %s1063_s24, 0 }
  0x1f   : > { %490 = sbr.rel (%p964_p7) target bundleno = 253 (0xfd), region = 52 }
  0x24   : > { %v502_v24 = vld [vmem:[#allocation2 + $0x8] sm:$0xff]  ;;  %v620_v25 = vld [vmem:[#allocation3 + $0x10] sm:$0xff]  ;;  %v501_v26 = vld [vmem:[#allocation2 + $0x18] sm:$0xff]  ;;  %vm503_vm0 = vcmask 261120  }
  0x25   : > { %997 = vmatprep.subr.mxu0 %v502_v24  ;;  %1011 = vmatprep.subr.mxu1 %v620_v25  ;;  %v619_v27 = vld [vmem:[#allocation3 + $0x8] sm:$0xff]  ;;  %v500_v28 = vld [vmem:[#allocation2] sm:$0xff]  ;;  %v618_v29 = vld [vmem:[#allocation3 + $0x18] sm:$0xff] }
  0x26   : > { %998 = vmatpush3.msra.mxu0 %v502_v24  ;;  %1012 = vmatpush3.msra.mxu1 %v620_v25  ;;  %v499_v30 = vld [vmem:[#allocation2 + $0x10] sm:$0xff]  ;;  %v617_v31 = vld [vmem:[#allocation3] sm:$0xff]  ;;  %v496_v34 = vld [vmem:[%s1259_s2 + $0x8] sm:$0xff] }
  0x27   : > { %999 = vmatprep.subr.mxu0 %v501_v26  ;;  %1013 = vmatprep.subr.mxu1 %v619_v27  ;;  %v495_v32 = vld [vmem:[%s1259_s2] sm:$0xff]  ;;  %v614_v35 = vld [vmem:[%s1260_s3 + $0x8] sm:$0xff]  ;;  %v497_v36 = vld [vmem:[%s1259_s2 + $0x10] sm:$0xff] }
  0x28   : > { %1000 = vmatpush3.msra.mxu0 %v501_v26  ;;  %1014 = vmatpush3.msra.mxu1 %v619_v27  ;;  %v613_v33 = vld [vmem:[%s1260_s3] sm:$0xff]  ;;  %v615_v37 = vld [vmem:[%s1260_s3 + $0x10] sm:$0xff]  ;;  %v498_v38 = vld [vmem:[%s1259_s2 + $0x18] sm:$0xff] }
  0x29   : > { %1001 = vmatprep.subr.mxu0 %v500_v28  ;;  %1015 = vmatprep.subr.mxu1 %v618_v29  ;;  %v616_v39 = vld [vmem:[%s1260_s3 + $0x18] sm:$0xff]  ;;  %v492_v40 = vld [vmem:[%s1139_s10 + $0x8] sm:$0xff]  ;;  %v491_v44 = vld [vmem:[%s1139_s10] sm:$0xff] }
  0x2a   : > { %1002 = vmatpush3.msra.mxu0 %v500_v28  ;;  %1016 = vmatpush3.msra.mxu1 %v618_v29  ;;  %v610_v41 = vld [vmem:[%s1144_s14 + $0x8] sm:$0xff]  ;;  %v609_v45 = vld [vmem:[%s1144_s14] sm:$0xff]  ;;  %v494_v57 = vld [vmem:[%s1139_s10 + $0x18] sm:$0xff] }
  0x2b   : > { %1003 = vmatprep.subr.mxu0 %v499_v30  ;;  %1017 = vmatprep.subr.mxu1 %v617_v31  ;;  %v735_v48 = vld [vmem:[%s1149_s17 + $0x8] sm:$0xff]  ;;  %v734_v55 = vld [vmem:[%s1149_s17] sm:$0xff]  ;;  %v612_v58 = vld [vmem:[%s1144_s14 + $0x18] sm:$0xff] }
  0x2c   : > { %1004 = vmatpush3.msra.mxu0 %v499_v30  ;;  %1005 = vmatprep.mubr.msk.f32.mxu0 %vm503_vm0, %v495_v32  ;;  %v747_v49 = vld [vmem:[%s1154_s20 + $0x8] sm:$0xff]  ;;  %v746_v59 = vld [vmem:[%s1154_s20] sm:$0xff]  ;;  %v493_v62 = vld [vmem:[%s1139_s10 + $0x10] sm:$0xff] }
  0x2d   : > { %1018 = vmatpush3.msra.mxu1 %v617_v31  ;;  %1019 = vmatprep.mubr.msk.f32.mxu1 %vm503_vm0, %v613_v33  ;;  %v611_v63 = vld [vmem:[%s1144_s14 + $0x10] sm:$0xff]  ;;  %v737_v10 = vld [vmem:[%s1149_s17 + $0x18] sm:$0xff] }
  0x2e   : > { %1006 = vmatmul.mubr.msk.f32.vlgmr.msra.gmra.mxu0 %vm503_vm0, %v496_v34  ;;  %1020 = vmatmul.mubr.msk.f32.vlgmr.msra.gmra.mxu1 %vm503_vm0, %v614_v35  ;;  %v749_v11 = vld [vmem:[%s1154_s20 + $0x18] sm:$0xff]  ;;  %v736_v16 = vld [vmem:[%s1149_s17 + $0x10] sm:$0xff] }
  0x2f   : > { %1008 = vmatprep.mubr.msk.f32.mxu0 %vm503_vm0, %v497_v36  ;;  %1022 = vmatprep.mubr.msk.f32.mxu1 %vm503_vm0, %v615_v37  ;;  %v748_v17 = vld [vmem:[%s1154_s20 + $0x10] sm:$0xff] }
  0x32   : > { %1009 = vmatmul.mubr.msk.f32.gmra.mxu0 %vm503_vm0, %v498_v38  ;;  %1023 = vmatmul.mubr.msk.f32.gmra.mxu1 %vm503_vm0, %v616_v39 }
  0xee   : > { %v1007_v42 = vpop.f32.mrf.mxu0  ;;  %v1021_v43 = vpop.f32.mrf.mxu1 }
  0xef   : > { %v602_v46 = vadd.f32 %v1007_v42, %v492_v40  ;;  %v719_v47 = vadd.f32 %v1021_v43, %v610_v41 }
  0xf0   : > { %v582_v50 = vpop.f32.mrf.mxu0  ;;  %v699_v51 = vpop.f32.mrf.mxu1 }
  0xf1   : > { %v606_v52 = vmax.f32 %v602_v46, 0.0  ;;  %v723_v53 = vmax.f32 %v719_v47, 0.0  ;;  %v601_v54 = vadd.f32 %v582_v50, %v491_v44  ;;  %v718_v56 = vadd.f32 %v699_v51, %v609_v45 }
  0xf2   : > { %v1010_v60 = vpop.f32.mrf.mxu0  ;;  %v1024_v61 = vpop.f32.mrf.mxu1 }
  0xf3   : > { %727 = vst [vmem:[#allocation2] sm:$0xff] %v606_v52  ;;  %v739_v0 = vadd.f32 %v735_v48, %v606_v52  ;;  %731 = vst [vmem:[#allocation3 + $0x18] sm:$0xff] %v723_v53  ;;  %v751_v1 = vadd.f32 %v747_v49, %v723_v53  ;;  %v605_v2 = vmax.f32 %v601_v54, 0.0  ;;  %v722_v3 = vmax.f32 %v718_v56, 0.0 }
  0xf4   : > { %v604_v4 = vadd.f32 %v1010_v60, %v494_v57  ;;  %v721_v5 = vadd.f32 %v1024_v61, %v612_v58  ;;  %v592_v6 = vpop.f32.mrf.mxu0  ;;  %v709_v7 = vpop.f32.mrf.mxu1 }
  0xf5   : > { %743 = vst [vmem:[%s1159_s23 + $0x8] sm:$0xff] %v739_v0  ;;  %755 = vst [vmem:[%s1164_s8 + $0x8] sm:$0xff] %v751_v1  ;;  %v738_v8 = vadd.f32 %v734_v55, %v605_v2  ;;  %v750_v9 = vadd.f32 %v746_v59, %v722_v3  ;;  %v603_v12 = vadd.f32 %v592_v6, %v493_v62 }
  0xf6   : > { %726 = vst [vmem:[#allocation2 + $0x10] sm:$0xff] %v605_v2  ;;  %730 = vst [vmem:[#allocation3] sm:$0xff] %v722_v3  ;;  %v720_v13 = vadd.f32 %v709_v7, %v611_v63  ;;  %v608_v14 = vmax.f32 %v604_v4, 0.0  ;;  %v725_v15 = vmax.f32 %v721_v5, 0.0 }
  0xf7   : > { %742 = vst [vmem:[%s1159_s23] sm:$0xff] %v738_v8  ;;  %754 = vst [vmem:[%s1164_s8] sm:$0xff] %v750_v9  ;;  %v607_v18 = vmax.f32 %v603_v12, 0.0 }
  0xf8   : > { %v724_v19 = vmax.f32 %v720_v13, 0.0  ;;  %729 = vst [vmem:[#allocation2 + $0x8] sm:$0xff] %v608_v14  ;;  %v741_v20 = vadd.f32 %v737_v10, %v608_v14  ;;  %733 = vst [vmem:[#allocation3 + $0x10] sm:$0xff] %v725_v15  ;;  %v753_v21 = vadd.f32 %v749_v11, %v725_v15 }
  0xf9   : > { %728 = vst [vmem:[#allocation2 + $0x18] sm:$0xff] %v607_v18  ;;  %v740_v22 = vadd.f32 %v736_v16, %v607_v18 }
  0xfa   : > { %732 = vst [vmem:[#allocation3 + $0x8] sm:$0xff] %v724_v19  ;;  %v752_v23 = vadd.f32 %v748_v17, %v724_v19  ;;  %745 = vst [vmem:[%s1159_s23 + $0x18] sm:$0xff] %v741_v20 }
  0xfb   : > { %757 = vst [vmem:[%s1164_s8 + $0x18] sm:$0xff] %v753_v21  ;;  %744 = vst [vmem:[%s1159_s23 + $0x10] sm:$0xff] %v740_v22 }
  0xfc   : > { %756 = vst [vmem:[%s1164_s8 + $0x10] sm:$0xff] %v752_v23 }
  0xfd PF: > { %s18_s26 = sadd.s32 1, %s1071_s26   ;;  %s1265_s24 = smov %s1067_s25 }
  0xfe   : > { %p15_p8 = scmp.ge.s32.totalorder %s18_s26, 10   ;;  %s1266_s25 = smov %s1268_s27 }
 0x100   :  { %17 = sbr.rel (!%p15_p8) target bundleno = 2 (0x2), region = 103 }

</bundles_post_ra>
